<compile_context>
chip_gen: v7x
topology: tpu7x:2x2x1
jax: 0.10.0
libtpu: 0.0.40
codegen_flags: <defaults>
</compile_context>

<pallas_src>
import functools

import jax
import jax.numpy as jnp
from jax.experimental import pallas as pl
from jax.experimental.pallas import tpu as pltpu

# ---------------- config (small, consistent with the module) ----------------
PREFIX_LENGTH = 8          # config.prefix_length
PREFIX_MID_DIM = 16        # config.prefix_mid_dim
EMBED_DIM = 32             # embed_dim
NUM_HEADS = 4              # num_heads
HEAD_DIM = EMBED_DIM // NUM_HEADS
BATCH = 2
SEQ = 8

_LANES = 128


# ---------------- fused kernel ----------------
def _prefix_kv_kernel(slab_ref, k_in_ref, v_in_ref, k_out_ref, v_out_ref, *,
                      dims, offs):
    """Prefix MLP + (P,2E)->(2,H,P,Dh) permute + batch broadcast + K/V concat."""
    B, H, P, Dh, M, EA = dims           # EA = padded (embed_dim + 1) contraction size
    o_w1, o_diag, o_w2, o_b2, o_cols, o_emb = offs
    f32 = jnp.float32
    MD, PD, BH = M * Dh, P * Dh, B * H

    # Zero-cost static views into the single packed parameter slab.
    w1_aug = slab_ref[o_w1:o_w1 + MD, 0:EA]       # (M*Dh, EA)  rows of w1.T repeated xDh | b1 | 0-pad
    diag = slab_ref[o_diag:o_diag + MD, 0:PD]     # (M*Dh, P*Dh) constant 0/1 mask (i%Dh == j%Dh)
    w2kv = slab_ref[o_w2:o_w2 + 2 * BH, 0:MD]     # (2*B*H, M*Dh) K/V fused, batch-tiled
    b2kv = slab_ref[o_b2:o_b2 + 2 * BH, 0:PD]     # (2*B*H, P*Dh)
    cols = slab_ref[o_cols:o_cols + P, 0:PD]      # (P, P*Dh) constant 0/1 column selector
    emb_aug = slab_ref[o_emb:o_emb + EA, 0:P]     # (EA, P)  emb.T ; ones-row ; 0-pad

    # First MLP layer (bias folded via the augmented ones column); the row
    # expansion by Dh is pre-folded into w1_aug, so no in-kernel transpose.
    h_exp = jnp.maximum(
        jnp.dot(w1_aug, emb_aug, preferred_element_type=f32), 0.0)          # (M*Dh, P)

    # Kronecker(hidden, I_Dh): one constant-selector matmul + constant mask.
    r = jnp.dot(h_exp, cols, preferred_element_type=f32) * diag             # (M*Dh, P*Dh)

    # Fused K+V second layer, pre-tiled over batch: rows align 1:1 with outputs.
    pref = jnp.dot(w2kv, r, preferred_element_type=f32) + b2kv              # (2*B*H, P*Dh)

    # Cast prefix halves BEFORE the lane concat (pass-through K/V untouched),
    # then one full-width (B*H, (P+S)*Dh) store per output.
    k_pref = pref[0:BH, :].astype(k_out_ref.dtype)
    v_pref = pref[BH:2 * BH, :].astype(v_out_ref.dtype)
    k_out_ref[...] = jnp.concatenate([k_pref, k_in_ref[...]], axis=1)
    v_out_ref[...] = jnp.concatenate([v_pref, v_in_ref[...]], axis=1)


# ---------------- forward wrapper ----------------
def prefix_tuning_forward(params, key_states, value_states, attention_mask=None):
    # TODO(synk): only the key_states.dim() == 4 layout of the torch module is
    # implemented (the dim == 5 branch is not exercised here); dropout is
    # inference-mode identity.
    B, H, S, Dh = key_states.shape
    E = H * Dh
    P = params["emb"].shape[0]
    M = params["w1"].shape[1]
    dtype = key_states.dtype
    f32 = jnp.float32

    # ---- parameter-only layout preprocessing (foldable into the checkpoint) ----
    emb = params["emb"].astype(f32)
    w1, b1 = params["w1"].astype(f32), params["b1"].astype(f32)
    w2, b2 = params["w2"].astype(f32), params["b2"].astype(f32)

    # First layer: fold row-expansion (xDh) and bias (augmented ones column),
    # pad the contraction dim to a multiple of 8 with zeros.
    ea = -(-(E + 1) // 8) * 8
    w1_aug = jnp.concatenate(
        [jnp.repeat(w1.T, Dh, axis=0), jnp.repeat(b1, Dh).reshape(M * Dh, 1)], axis=1)
    w1_aug = jnp.pad(w1_aug, ((0, 0), (0, ea - (E + 1))))                    # (M*Dh, ea)
    emb_aug = jnp.concatenate([emb.T, jnp.ones((1, P), f32)], axis=0)
    emb_aug = jnp.pad(emb_aug, ((0, ea - (E + 1)), (0, 0)))                  # (ea, P)

    # Second layer: per-head lane layout, K/V fused and pre-tiled over batch.
    def _head_layout(w_half):                                                # (M, E) -> (H, M*Dh)
        return w_half.reshape(M, H, Dh).transpose(1, 0, 2).reshape(H, M * Dh)

    w2kv = jnp.concatenate([jnp.tile(_head_layout(w2[:, :E]), (B, 1)),
                            jnp.tile(_head_layout(w2[:, E:]), (B, 1))], axis=0)   # (2BH, M*Dh)
    b2kv = jnp.concatenate([jnp.tile(jnp.tile(b2[:E].reshape(H, Dh), (1, P)), (B, 1)),
                            jnp.tile(jnp.tile(b2[E:].reshape(H, Dh), (1, P)), (B, 1))],
                           axis=0)                                                # (2BH, P*Dh)

    # Constant selector / diag matrices (compile-time constants; built once here
    # instead of iota/compare/cast VPU work inside the kernel every call).
    cols = (jnp.arange(P)[:, None] == (jnp.arange(P * Dh) // Dh)[None, :]).astype(f32)
    diag = ((jnp.arange(M * Dh) % Dh)[:, None]
            == (jnp.arange(P * Dh) % Dh)[None, :]).astype(f32)

    # ---- pack everything into ONE lane-dense (rows, 128) f32 slab ----
    pieces = [w1_aug, diag, w2kv, b2kv, cols, emb_aug]
    assert all(p_.shape[1] <= _LANES for p_ in pieces)
    offs, nrows = [], 0
    for p_ in pieces:
        offs.append(nrows)
        nrows += p_.shape[0]
    slab_rows = -(-nrows // 8) * 8
    slab = jnp.concatenate(
        [jnp.pad(p_, ((0, 0), (0, _LANES - p_.shape[1]))) for p_ in pieces], axis=0)
    slab = jnp.pad(slab, ((0, slab_rows - nrows), (0, 0)))

    # Lane-dense flattening of K/V (contiguous reshapes -- effectively free).
    k_flat = key_states.reshape(B * H, S * Dh)
    v_flat = value_states.reshape(B * H, S * Dh)

    vmem = pl.BlockSpec(memory_space=pltpu.MemorySpace.VMEM)
    kern = functools.partial(_prefix_kv_kernel,
                             dims=(B, H, P, Dh, M, ea), offs=tuple(offs))
    k_of, v_of = pl.pallas_call(
        kern,
        out_shape=(jax.ShapeDtypeStruct((B * H, (P + S) * Dh), dtype),
                   jax.ShapeDtypeStruct((B * H, (P + S) * Dh), dtype)),
        in_specs=[vmem, vmem, vmem],
        out_specs=(vmem, vmem),
    )(slab, k_flat, v_flat)

    key_out = k_of.reshape(B, H, P + S, Dh)
    value_out = v_of.reshape(B, H, P + S, Dh)

    # Prefix attention-mask pad kept outside the Pallas call (review: avoids two
    # lane-sparse DMAs; XLA can fuse the zero-pad into the downstream consumer).
    if attention_mask is not None:
        mask_out = jnp.pad(attention_mask, ((0, 0), (0, 0), (0, 0), (P, 0)))
    else:
        mask_out = None
    return key_out, value_out, mask_out


# ---------------- pure-JAX reference for verification ----------------
def reference_forward(params, key_states, value_states, attention_mask):
    h = jnp.maximum(params["emb"] @ params["w1"] + params["b1"], 0.0)
    prefix = h @ params["w2"] + params["b2"]
    prefix = prefix.reshape(PREFIX_LENGTH, 2, NUM_HEADS, HEAD_DIM).transpose(1, 2, 0, 3)
    B = key_states.shape[0]
    kp = jnp.broadcast_to(prefix[0][None], (B,) + prefix[0].shape)
    vp = jnp.broadcast_to(prefix[1][None], (B,) + prefix[1].shape)
    key_out = jnp.concatenate([kp, key_states], axis=-2)
    value_out = jnp.concatenate([vp, value_states], axis=-2)
    prompt_mask = jnp.zeros((B, 1, attention_mask.shape[2], PREFIX_LENGTH),
                            dtype=attention_mask.dtype)
    mask_out = jnp.concatenate([prompt_mask, attention_mask], axis=-1)
    return key_out, value_out, mask_out


if __name__ == "__main__":
    key = jax.random.PRNGKey(0)
    k_emb, k_w1, k_b1, k_w2, k_b2, k_k, k_v, k_m = jax.random.split(key, 8)

    params = {
        # nn.Embedding(prefix_length, embed_dim).weight
        "emb": jax.random.normal(k_emb, (PREFIX_LENGTH, EMBED_DIM), jnp.float32),
        # nn.Linear(embed_dim, prefix_mid_dim)
        "w1": jax.random.normal(k_w1, (EMBED_DIM, PREFIX_MID_DIM), jnp.float32) * 0.1,
        "b1": jax.random.normal(k_b1, (PREFIX_MID_DIM,), jnp.float32) * 0.1,
        # nn.Linear(prefix_mid_dim, 2 * embed_dim)
        "w2": jax.random.normal(k_w2, (PREFIX_MID_DIM, 2 * EMBED_DIM), jnp.float32) * 0.1,
        "b2": jax.random.normal(k_b2, (2 * EMBED_DIM,), jnp.float32) * 0.1,
    }

    key_states = jax.random.normal(k_k, (BATCH, NUM_HEADS, SEQ, HEAD_DIM), jnp.float32)
    value_states = jax.random.normal(k_v, (BATCH, NUM_HEADS, SEQ, HEAD_DIM), jnp.float32)
    attention_mask = jax.random.normal(k_m, (BATCH, 1, SEQ, SEQ), jnp.float32)

    fwd = jax.jit(prefix_tuning_forward)
    k_out, v_out, m_out = fwd(params, key_states, value_states, attention_mask)
    jax.block_until_ready((k_out, v_out, m_out))

    k_ref, v_ref, m_ref = reference_forward(params, key_states, value_states,
                                            attention_mask)
    assert k_out.shape == (BATCH, NUM_HEADS, PREFIX_LENGTH + SEQ, HEAD_DIM)
    assert v_out.shape == (BATCH, NUM_HEADS, PREFIX_LENGTH + SEQ, HEAD_DIM)
    assert m_out.shape == (BATCH, 1, SEQ, PREFIX_LENGTH + SEQ)
    assert jnp.allclose(k_out, k_ref, atol=1e-5, rtol=1e-5)
    assert jnp.allclose(v_out, v_ref, atol=1e-5, rtol=1e-5)
    assert jnp.allclose(m_out, m_ref, atol=1e-5, rtol=1e-5)

    print("KERNEL_OK")
</pallas_src>

<mosaic_0001>
module attributes {stable_mosaic.version = 11 : i64} {
  func.func @_prefix_kv_kernel(%arg0: memref<336x128xf32, #tpu.memory_space<vmem>>, %arg1: memref<8x64xf32, #tpu.memory_space<vmem>>, %arg2: memref<8x64xf32, #tpu.memory_space<vmem>>, %arg3: memref<8x128xf32, #tpu.memory_space<vmem>>, %arg4: memref<8x128xf32, #tpu.memory_space<vmem>>) attributes {dimension_semantics = [], scalar_prefetch = 0 : i64, scratch_operands = 0 : i64, tpu.core_type = #tpu.core_type<tc>} {
    %c0 = arith.constant 0 : index
    %c0_0 = arith.constant 0 : index
    %0 = vector.load %arg0[%c0, %c0_0] : memref<336x128xf32, #tpu.memory_space<vmem>>, vector<128x40xf32>
    %c128 = arith.constant 128 : index
    %c0_1 = arith.constant 0 : index
    %1 = vector.load %arg0[%c128, %c0_1] : memref<336x128xf32, #tpu.memory_space<vmem>>, vector<128x64xf32>
    %c256 = arith.constant 256 : index
    %c0_2 = arith.constant 0 : index
    %2 = vector.load %arg0[%c256, %c0_2] : memref<336x128xf32, #tpu.memory_space<vmem>>, vector<16x128xf32>
    %c272 = arith.constant 272 : index
    %c0_3 = arith.constant 0 : index
    %3 = vector.load %arg0[%c272, %c0_3] : memref<336x128xf32, #tpu.memory_space<vmem>>, vector<16x64xf32>
    %c288 = arith.constant 288 : index
    %c0_4 = arith.constant 0 : index
    %4 = vector.load %arg0[%c288, %c0_4] : memref<336x128xf32, #tpu.memory_space<vmem>>, vector<8x64xf32>
    %c296 = arith.constant 296 : index
    %c0_5 = arith.constant 0 : index
    %5 = vector.load %arg0[%c296, %c0_5] : memref<336x128xf32, #tpu.memory_space<vmem>>, vector<40x8xf32>
    %cst = arith.constant dense<0.000000e+00> : vector<128x8xf32>
    %6 = tpu.matmul %0, %5, %cst {dimension_numbers = #tpu.dot_dimension_numbers<[1], [0], [0], [1], [0, 0, 1, 1], [], []>} : vector<128x40xf32>, vector<40x8xf32>, vector<128x8xf32> -> vector<128x8xf32>
    %cst_6 = arith.constant 0.000000e+00 : f32
    %7 = vector.broadcast %cst_6 : f32 to vector<128x8xf32>
    %8 = arith.maximumf %6, %7 : vector<128x8xf32>
    %cst_7 = arith.constant dense<0.000000e+00> : vector<128x64xf32>
    %9 = tpu.matmul %8, %4, %cst_7 {dimension_numbers = #tpu.dot_dimension_numbers<[1], [0], [0], [1], [0, 0, 1, 1], [], []>} : vector<128x8xf32>, vector<8x64xf32>, vector<128x64xf32> -> vector<128x64xf32>
    %10 = arith.mulf %9, %1 : vector<128x64xf32>
    %cst_8 = arith.constant dense<0.000000e+00> : vector<16x64xf32>
    %11 = tpu.matmul %2, %10, %cst_8 {dimension_numbers = #tpu.dot_dimension_numbers<[1], [0], [0], [1], [0, 0, 1, 1], [], []>} : vector<16x128xf32>, vector<128x64xf32>, vector<16x64xf32> -> vector<16x64xf32>
    %12 = arith.addf %11, %3 : vector<16x64xf32>
    %13 = vector.extract_strided_slice %12 {offsets = [0, 0], sizes = [8, 64], strides = [1, 1]} : vector<16x64xf32> to vector<8x64xf32>
    %14 = vector.extract_strided_slice %12 {offsets = [8, 0], sizes = [8, 64], strides = [1, 1]} : vector<16x64xf32> to vector<8x64xf32>
    %c0_9 = arith.constant 0 : index
    %c0_10 = arith.constant 0 : index
    %15 = vector.load %arg1[%c0_9, %c0_10] : memref<8x64xf32, #tpu.memory_space<vmem>>, vector<8x64xf32>
    %16 = tpu.concatenate %13, %15 in 1 : vector<8x64xf32>, vector<8x64xf32> -> vector<8x128xf32>
    %c0_11 = arith.constant 0 : index
    %c0_12 = arith.constant 0 : index
    %17 = vector.load %arg3[%c0_11, %c0_12] : memref<8x128xf32, #tpu.memory_space<vmem>>, vector<8x128xf32>
    tpu.vector_store %arg3[%c0_11, %c0_12], %16 {strides = array<i32>} : memref<8x128xf32, #tpu.memory_space<vmem>>, vector<8x128xf32>,
    %c0_13 = arith.constant 0 : index
    %c0_14 = arith.constant 0 : index
    %18 = vector.load %arg2[%c0_13, %c0_14] : memref<8x64xf32, #tpu.memory_space<vmem>>, vector<8x64xf32>
    %19 = tpu.concatenate %14, %18 in 1 : vector<8x64xf32>, vector<8x64xf32> -> vector<8x128xf32>
    %c0_15 = arith.constant 0 : index
    %c0_16 = arith.constant 0 : index
    %20 = vector.load %arg4[%c0_15, %c0_16] : memref<8x128xf32, #tpu.memory_space<vmem>>, vector<8x128xf32>
    tpu.vector_store %arg4[%c0_15, %c0_16], %19 {strides = array<i32>} : memref<8x128xf32, #tpu.memory_space<vmem>>, vector<8x128xf32>,
    return
  }
}

</mosaic_0001>

<bundles_post_ra>
// kernel: prefix_tuning_forward.1
= control target key start
LH: loop header
LB: loop body
LE: loop exit
PB: predicated region body
PF: predicated region fallthrough
CT: control target
= control target key end

     0   :  { %vm58_vm0 = vcmask 326656   ;;  %vm268_vm1 = vcmask 64512   ;;  %s800_s11 = smov 64   ;;  %vm558_vm2 = vcmask 523264   ;;  %s996_s0 = inlined_call_operand.vmem [shape: f32[336,128], index: 0, kind: input, shape index: {}]   ;;  %s997_s1 = inlined_call_operand.vmem [shape: f32[8,64], index: 1, kind: input, shape index: {}]   ;;  %s998_s2 = inlined_call_operand.vmem [shape: f32[8,64], index: 2, kind: input, shape index: {}]   ;;  %s999_s4 = inlined_call_operand.vmem [shape: f32[8,128], index: 4, kind: output, shape index: {1}]   ;;  %s1000_s3 = inlined_call_operand.vmem [shape: f32[8,128], index: 3, kind: output, shape index: {0}]  }
   0x1   :  { %v53_v0 = vld [vmem:[%s996_s0 + $0x128] sm:$0xff]  ;;  %v54_v1 = vld [vmem:[%s996_s0 + $0x130] sm:$0xff]  ;;  %v55_v2 = vld [vmem:[%s996_s0 + $0x138] sm:$0xff] }
   0x2   :  { %v759_v3 = vpack.c.bf16 %v54_v1, %v53_v0  ;;  %v56_v4 = vld [vmem:[%s996_s0 + $0x140] sm:$0xff]  ;;  %v57_v7 = vld [vmem:[%s996_s0 + $0x148] sm:$0xff]  ;;  %v18_v9 = vld [vmem:[%s996_s0 + $0x10] sm:$0xff] }
   0x3   :  { %v16_v5 = vld [vmem:[%s996_s0] sm:$0xff]  ;;  %v763_v6 = vpack.c.bf16 %v56_v4, %v55_v2  ;;  %v17_v8 = vld [vmem:[%s996_s0 + $0x8] sm:$0xff]  ;;  %v19_v10 = vld [vmem:[%s996_s0 + $0x18] sm:$0xff] }
   0x4   :  { %674 = vmatprep.mubr.msk.f32.mxu0 %vm58_vm0, %v16_v5  ;;  %760 = vmatprep.subr.bf16.mxu0 %v759_v3  ;;  %v20_v11 = vld [vmem:[%s996_s0 + $0x20] sm:$0xff]  ;;  %v21_v12 = vld [vmem:[%s996_s0 + $0x28] sm:$0xff]  ;;  %v22_v13 = vld [vmem:[%s996_s0 + $0x30] sm:$0xff] }
   0x5   :  { %762 = vmatpush3.bf16.msra.mxu0 %v759_v3  ;;  %v23_v14 = vld [vmem:[%s996_s0 + $0x38] sm:$0xff]  ;;  %v24_v15 = vld [vmem:[%s996_s0 + $0x40] sm:$0xff]  ;;  %v25_v16 = vld [vmem:[%s996_s0 + $0x48] sm:$0xff] }
   0x6   :  { %764 = vmatprep.subr.bf16.mxu0 %v763_v6  ;;  %v26_v17 = vld [vmem:[%s996_s0 + $0x50] sm:$0xff]  ;;  %v27_v18 = vld [vmem:[%s996_s0 + $0x58] sm:$0xff]  ;;  %v28_v19 = vld [vmem:[%s996_s0 + $0x60] sm:$0xff] }
   0x7   :  { %v29_v20 = vld [vmem:[%s996_s0 + $0x68] sm:$0xff]  ;;  %v30_v21 = vld [vmem:[%s996_s0 + $0x70] sm:$0xff]  ;;  %v31_v22 = vld [vmem:[%s996_s0 + $0x78] sm:$0xff] }
   0x8   :  { %v52_v23 = vld [vmem:[%s996_s0 + $0x120] sm:$0xff]  ;;  %v33_v59 = vld [vmem:[%s996_s0 + $0x88] sm:$0xff]  ;;  %v35_v1 = vld [vmem:[%s996_s0 + $0x98] sm:$0xff] }
   0x9   :  { %766 = vmatpush3.bf16.msra.mxu0 %v763_v6  ;;  %698 = vmatprep.subr.mxu1 %v52_v23  ;;  %v48_v56 = vld [vmem:[%s996_s0 + $0x100] sm:$0xff]  ;;  %v34_v2 = vld [vmem:[%s996_s0 + $0x90] sm:$0xff] }
   0xa   :  { %672 = vmatprep.subr.mxu0 %v57_v7  ;;  %699 = vmatpush3.msra.mxu1 %v52_v23  ;;  %v553_v57 = vld [vmem:[%s997_s1] sm:$0xff] }
   0xb   :  { %555 = vrot.lane.b32.xlu0 %v553_v57, %s800_s11  ;;  %v561_v58 = vld [vmem:[%s998_s2] sm:$0xff] }
   0xc   :  { %v32_v60 = vld [vmem:[%s996_s0 + $0x80] sm:$0xff] }
   0xd   :  { %673 = vmatpush3.msra.mxu0 %v57_v7  ;;  %v40_v23 = vld [vmem:[%s996_s0 + $0xc0] sm:$0xff] }
   0xe   :  { %675 = vmatmul.mubr.msk.f32.vlgmr.msra.gmra.mrb[0].mxu0 %vm58_vm0, %v17_v8  ;;  %v37_v8 = vld [vmem:[%s996_s0 + $0xa8] sm:$0xff] }
   0xf   :  { %677 = vmatprep.mubr.msk.f32.mxu0 %vm58_vm0, %v18_v9  ;;  %563 = vrot.lane.b32.xlu0 %v561_v58, %s800_s11  ;;  %v36_v9 = vld [vmem:[%s996_s0 + $0xa0] sm:$0xff] }
  0x12   :  { %678 = vmatmul.mubr.msk.f32.gmra.mrb[2].mxu0 %vm58_vm0, %v19_v10 }
  0x13   :  { %680 = vmatprep.mubr.msk.f32.mxu0 %vm58_vm0, %v20_v11 }
  0x16   :  { %681 = vmatmul.mubr.msk.f32.gmra.mrb[4].mxu0 %vm58_vm0, %v21_v12 }
  0x17   :  { %683 = vmatprep.mubr.msk.f32.mxu0 %vm58_vm0, %v22_v13 }
  0x1a   :  { %684 = vmatmul.mubr.msk.f32.gmra.mrb[6].mxu0 %vm58_vm0, %v23_v14 }
  0x1b   :  { %686 = vmatprep.mubr.msk.f32.mxu0 %vm58_vm0, %v24_v15  ;;  %v39_v15 = vld [vmem:[%s996_s0 + $0xb8] sm:$0xff] }
  0x1e   :  { %687 = vmatmul.mubr.msk.f32.gmra.mrb[8].mxu0 %vm58_vm0, %v25_v16  ;;  %v38_v16 = vld [vmem:[%s996_s0 + $0xb0] sm:$0xff] }
  0x1f   :  { %689 = vmatprep.mubr.msk.f32.mxu0 %vm58_vm0, %v26_v17 }
  0x22   :  { %690 = vmatmul.mubr.msk.f32.gmra.mrb[10].mxu0 %vm58_vm0, %v27_v18 }
  0x23   :  { %692 = vmatprep.mubr.msk.f32.mxu0 %vm58_vm0, %v28_v19 }
  0x26   :  { %693 = vmatmul.mubr.msk.f32.gmra.mrb[12].mxu0 %vm58_vm0, %v29_v20 }
  0x27   :  { %695 = vmatprep.mubr.msk.f32.mxu0 %vm58_vm0, %v30_v21 }
  0x2a   :  { %696 = vmatmul.mubr.msk.f32.gmra.mrb[14].mxu0 %vm58_vm0, %v31_v22  ;;  %v41_v22 = vld [vmem:[%s996_s0 + $0xc8] sm:$0xff] }
  0xe1   :  { %v676_v24 = vpop.f32.mrb[0].mxu0 }
  0xe2   :  { %v173_v25 = vpop.f32.mrb[1].mxu0  ;;  %v253_v27 = vmax.f32 %v676_v24, 0.0 }
  0xe3   :  { %v252_v26 = vmax.f32 %v173_v25, 0.0 }
  0xe5   :  { %v679_v28 = vpop.f32.mrb[2].mxu0  ;;  %700 = vmatprep.mubr.msk.f32.mxu1 %vm268_vm1, %v252_v26 }
  0xe6   :  { %v183_v29 = vpop.f32.mrb[3].mxu0  ;;  %701 = vmatmul.mubr.msk.f32.vlgmr.msra.gmra.mrb[0].mxu1 %vm268_vm1, %v253_v27  ;;  %v255_v31 = vmax.f32 %v679_v28, 0.0 }
  0xe7   :  { %v254_v30 = vmax.f32 %v183_v29, 0.0  ;;  %v43_v29 = vld [vmem:[%s996_s0 + $0xd8] sm:$0xff] }
  0xe9   :  { %v682_v32 = vpop.f32.mrb[4].mxu0  ;;  %703 = vmatprep.mubr.msk.f32.mxu1 %vm268_vm1, %v254_v30  ;;  %v42_v30 = vld [vmem:[%s996_s0 + $0xd0] sm:$0xff] }
  0xea   :  { %v193_v33 = vpop.f32.mrb[5].mxu0  ;;  %704 = vmatmul.mubr.msk.f32.gmra.mrb[2].mxu1 %vm268_vm1, %v255_v31  ;;  %v257_v35 = vmax.f32 %v682_v32, 0.0 }
  0xeb   :  { %v256_v34 = vmax.f32 %v193_v33, 0.0 }
  0xed   :  { %v685_v36 = vpop.f32.mrb[6].mxu0  ;;  %706 = vmatprep.mubr.msk.f32.mxu1 %vm268_vm1, %v256_v34 }
  0xee   :  { %v203_v37 = vpop.f32.mrb[7].mxu0  ;;  %707 = vmatmul.mubr.msk.f32.gmra.mrb[4].mxu1 %vm268_vm1, %v257_v35  ;;  %v259_v39 = vmax.f32 %v685_v36, 0.0  ;;  %v45_v36 = vld [vmem:[%s996_s0 + $0xe8] sm:$0xff] }
  0xef   :  { %v258_v38 = vmax.f32 %v203_v37, 0.0  ;;  %v44_v37 = vld [vmem:[%s996_s0 + $0xe0] sm:$0xff] }
  0xf1   :  { %v688_v40 = vpop.f32.mrb[8].mxu0  ;;  %709 = vmatprep.mubr.msk.f32.mxu1 %vm268_vm1, %v258_v38 }
  0xf2   :  { %v213_v41 = vpop.f32.mrb[9].mxu0  ;;  %710 = vmatmul.mubr.msk.f32.gmra.mrb[6].mxu1 %vm268_vm1, %v259_v39  ;;  %v261_v43 = vmax.f32 %v688_v40, 0.0 }
  0xf3   :  { %v260_v42 = vmax.f32 %v213_v41, 0.0 }
  0xf5   :  { %v691_v44 = vpop.f32.mrb[10].mxu0  ;;  %712 = vmatprep.mubr.msk.f32.mxu1 %vm268_vm1, %v260_v42 }
  0xf6   :  { %v223_v45 = vpop.f32.mrb[11].mxu0  ;;  %713 = vmatmul.mubr.msk.f32.gmra.mrb[8].mxu1 %vm268_vm1, %v261_v43  ;;  %v263_v47 = vmax.f32 %v691_v44, 0.0  ;;  %v47_v43 = vld [vmem:[%s996_s0 + $0xf8] sm:$0xff]  ;;  %v46_v44 = vld [vmem:[%s996_s0 + $0xf0] sm:$0xff] }
  0xf7   :  { %v262_v46 = vmax.f32 %v223_v45, 0.0 }
  0xf9   :  { %v694_v48 = vpop.f32.mrb[12].mxu0  ;;  %715 = vmatprep.mubr.msk.f32.mxu1 %vm268_vm1, %v262_v46 }
  0xfa   :  { %v233_v49 = vpop.f32.mrb[13].mxu0  ;;  %716 = vmatmul.mubr.msk.f32.gmra.mrb[10].mxu1 %vm268_vm1, %v263_v47  ;;  %v265_v51 = vmax.f32 %v694_v48, 0.0 }
  0xfb   :  { %v264_v50 = vmax.f32 %v233_v49, 0.0 }
  0xfd   :  { %v697_v52 = vpop.f32.mrb[14].mxu0  ;;  %718 = vmatprep.mubr.msk.f32.mxu1 %vm268_vm1, %v264_v50 }
  0xfe   :  { %v243_v53 = vpop.f32.mrb[15].mxu0  ;;  %719 = vmatmul.mubr.msk.f32.gmra.mrb[12].mxu1 %vm268_vm1, %v265_v51  ;;  %v267_v55 = vmax.f32 %v697_v52, 0.0  ;;  %v49_v51 = vld [vmem:[%s996_s0 + $0x108] sm:$0xff]  ;;  %v556_v52 = vpop.permute.xlu0 %555 }
  0xff   :  { %v266_v54 = vmax.f32 %v243_v53, 0.0  ;;  %v51_v53 = vld [vmem:[%s996_s0 + $0x118] sm:$0xff] }
 0x101   :  { %721 = vmatprep.mubr.msk.f32.mxu1 %vm268_vm1, %v266_v54  ;;  %v50_v54 = vld [vmem:[%s996_s0 + $0x110] sm:$0xff] }
 0x102   :  { %722 = vmatmul.mubr.msk.f32.gmra.mrb[14].mxu1 %vm268_vm1, %v267_v55 }
 0x103   :  { %756 = vmatprep.mubr.f32.mxu1 %v48_v56  ;;  %v564_v56 = vpop.permute.xlu0 %563 }
 0x1b9   :  { %v702_v61 = vpop.f32.mrb[0].mxu1 }
 0x1ba   :  { %v463_v62 = vmul.f32 %v702_v61, %v33_v59  ;;  %v383_v63 = vpop.f32.mrb[1].mxu1 }
 0x1bb   :  { %v462_v0 = vmul.f32 %v383_v63, %v32_v60 }
 0x1bd   :  { %v767_v3 = vpack.c.bf16 %v463_v62, %v462_v0  ;;  %v705_v4 = vpop.f32.mrb[2].mxu1 }
 0x1be   :  { %v465_v5 = vmul.f32 %v705_v4, %v35_v1  ;;  %v393_v6 = vpop.f32.mrb[3].mxu1 }
 0x1bf   :  { %v464_v7 = vmul.f32 %v393_v6, %v34_v2  ;;  %768 = vmatprep.subr.bf16.mxu1 %v767_v3 }
 0x1c0   :  { %770 = vmatpush3.bf16.msra.mxu1 %v767_v3 }
 0x1c1   :  { %v771_v10 = vpack.c.bf16 %v465_v5, %v464_v7  ;;  %v708_v11 = vpop.f32.mrb[4].mxu1 }
 0x1c2   :  { %v467_v12 = vmul.f32 %v708_v11, %v37_v8  ;;  %v403_v13 = vpop.f32.mrb[5].mxu1 }
 0x1c3   :  { %v466_v14 = vmul.f32 %v403_v13, %v36_v9  ;;  %772 = vmatprep.subr.bf16.mxu1 %v771_v10 }
 0x1c4   :  { %774 = vmatpush3.bf16.msra.mxu1 %v771_v10 }
 0x1c5   :  { %v775_v17 = vpack.c.bf16 %v467_v12, %v466_v14  ;;  %v711_v18 = vpop.f32.mrb[6].mxu1 }
 0x1c6   :  { %v469_v19 = vmul.f32 %v711_v18, %v39_v15  ;;  %v413_v20 = vpop.f32.mrb[7].mxu1 }
 0x1c7   :  { %v468_v21 = vmul.f32 %v413_v20, %v38_v16  ;;  %776 = vmatprep.subr.bf16.mxu1 %v775_v17 }
 0x1c8   :  { %778 = vmatpush3.bf16.msra.mxu1 %v775_v17 }
 0x1c9   :  { %v779_v24 = vpack.c.bf16 %v469_v19, %v468_v21  ;;  %v714_v25 = vpop.f32.mrb[8].mxu1 }
 0x1ca   :  { %v471_v26 = vmul.f32 %v714_v25, %v41_v22  ;;  %v423_v27 = vpop.f32.mrb[9].mxu1 }
 0x1cb   :  { %v470_v28 = vmul.f32 %v423_v27, %v40_v23  ;;  %780 = vmatprep.subr.bf16.mxu1 %v779_v24 }
 0x1cc   :  { %782 = vmatpush3.bf16.msra.mxu1 %v779_v24 }
 0x1cd   :  { %v783_v31 = vpack.c.bf16 %v471_v26, %v470_v28  ;;  %v717_v32 = vpop.f32.mrb[10].mxu1 }
 0x1ce   :  { %v473_v33 = vmul.f32 %v717_v32, %v43_v29  ;;  %v433_v34 = vpop.f32.mrb[11].mxu1 }
 0x1cf   :  { %v472_v35 = vmul.f32 %v433_v34, %v42_v30  ;;  %784 = vmatprep.subr.bf16.mxu1 %v783_v31 }
 0x1d0   :  { %786 = vmatpush3.bf16.msra.mxu1 %v783_v31 }
 0x1d1   :  { %v787_v38 = vpack.c.bf16 %v473_v33, %v472_v35  ;;  %v720_v39 = vpop.f32.mrb[12].mxu1 }
 0x1d2   :  { %v475_v40 = vmul.f32 %v720_v39, %v45_v36  ;;  %v443_v41 = vpop.f32.mrb[13].mxu1 }
 0x1d3   :  { %v474_v42 = vmul.f32 %v443_v41, %v44_v37  ;;  %788 = vmatprep.subr.bf16.mxu1 %v787_v38 }
 0x1d4   :  { %790 = vmatpush3.bf16.msra.mxu1 %v787_v38 }
 0x1d5   :  { %v791_v45 = vpack.c.bf16 %v475_v40, %v474_v42  ;;  %v723_v46 = vpop.f32.mrb[14].mxu1 }
 0x1d6   :  { %v477_v47 = vmul.f32 %v723_v46, %v47_v43  ;;  %v453_v48 = vpop.f32.mrb[15].mxu1 }
 0x1d7   :  { %v476_v49 = vmul.f32 %v453_v48, %v46_v44  ;;  %792 = vmatprep.subr.bf16.mxu1 %v791_v45 }
 0x1d8   :  { %794 = vmatpush3.bf16.msra.mxu1 %v791_v45 }
 0x1d9   :  { %v795_v50 = vpack.c.bf16 %v477_v47, %v476_v49 }
 0x1db   :  { %796 = vmatprep.subr.bf16.mxu1 %v795_v50 }
 0x1dc   :  { %798 = vmatpush3.bf16.msra.mxu1 %v795_v50 }
 0x1df   :  { %757 = vmatmul.mubr.f32.vlgmr.msra.gmra.mrb[16].mxu1 %v49_v51 }
 0x2b2   :  { %v758_v55 = vpop.f32.mrb[16].mxu1 }
 0x2b3   :  { %v550_v57 = vadd.f32 %v758_v55, %v51_v53  ;;  %v544_v58 = vpop.f32.mrb[17].mxu1 }
 0x2b4   :  { %v545_v59 = vadd.f32 %v544_v58, %v50_v54 }
 0x2b5   :  { %v566_v60 = vsel %vm558_vm2, %v550_v57, %v564_v56 }
 0x2b6   :  { %v559_v61 = vsel %vm558_vm2, %v545_v59, %v556_v52  ;;  %567 = vst [vmem:[%s999_s4] sm:$0xff] %v566_v60 }
 0x2b7   :  { %560 = vst [vmem:[%s1000_s3] sm:$0xff] %v559_v61 }

</bundles_post_ra>
